<compile_context>
chip_gen: v7x
topology: tpu7x:2x2x1
jax: 0.10.0
libtpu: 0.0.40
codegen_flags: <defaults>
</compile_context>

<pallas_src>
import jax
import jax.numpy as jnp
from jax.experimental import pallas as pl
from jax.experimental.pallas import tpu as pltpu

LANE = 128  # TPU lane width; hidden/output feature dims of the *weights* are padded to this.


def _leaky_relu(x, slope=0.01):
    return jnp.where(x > 0, x, slope * x)


def _round_up(n, m):
    return ((n + m - 1) // m) * m


# ---------------------------------------------------------------------------
# Kernel
# ---------------------------------------------------------------------------
def dqn_kernel(x_ref, w1_ref, b1_ref, w2_ref, b2_ref, w3_ref, b3_ref, o_ref):
    # x_ref: [tile_b, state_dim] f32 (natural, unpadded feature dim).
    # w*: bf16, lane-padded on the output-feature axis. b*: f32 [1, H_pad].
    # o_ref: [tile_b, action_dim] f32 (natural, unpadded).
    x = x_ref[...].astype(jnp.bfloat16)

    h1 = jnp.dot(x, w1_ref[...], preferred_element_type=jnp.float32) + b1_ref[...]
    h1 = _leaky_relu(h1).astype(jnp.bfloat16)

    h2 = jnp.dot(h1, w2_ref[...], preferred_element_type=jnp.float32) + b2_ref[...]
    h2 = _leaky_relu(h2).astype(jnp.bfloat16)

    out = jnp.dot(h2, w3_ref[...], preferred_element_type=jnp.float32) + b3_ref[...]

    # Emit only the real action lanes (block last dim == full output array dim).
    a = o_ref.shape[1]
    o_ref[...] = out[:, :a].astype(o_ref.dtype)


# ---------------------------------------------------------------------------
# One-time parameter preparation (hoisted out of the per-call forward)
# ---------------------------------------------------------------------------
def prepare_params(params):
    """Pad weights/biases to lane multiples and cast weights to bf16 ONCE.

    `params` holds f32 arrays with weights [in_features, out_features]
    (transpose of PyTorch) and biases [1, out_features]. Call this once per
    parameter update; reuse the result for every forward call.
    Zero padding is exact: padded columns contribute 0, padded bias lanes are
    0, and LeakyReLU(0) == 0.
    """
    state_dim = params["w1"].shape[0]
    hidden1 = params["w1"].shape[1]
    hidden2 = params["w2"].shape[1]
    action_dim = params["w3"].shape[1]

    H1_P = _round_up(hidden1, LANE)
    H2_P = _round_up(hidden2, LANE)
    A_P = _round_up(action_dim, LANE)

    def pad2(a, r, c, dtype):
        out = jnp.zeros((r, c), dtype)
        return out.at[: a.shape[0], : a.shape[1]].set(a.astype(dtype))

    prepared = {
        "w1": pad2(params["w1"], state_dim, H1_P, jnp.bfloat16),
        "b1": pad2(params["b1"], 1, H1_P, jnp.float32),
        "w2": pad2(params["w2"], H1_P, H2_P, jnp.bfloat16),
        "b2": pad2(params["b2"], 1, H2_P, jnp.float32),
        "w3": pad2(params["w3"], H2_P, A_P, jnp.bfloat16),
        "b3": pad2(params["b3"], 1, A_P, jnp.float32),
        "state_dim": int(state_dim),
        "action_dim": int(action_dim),
    }
    return prepared


def _pick_tile_b(B, num_batch_tiles):
    """Batch-tile selection.

    v5e / v6e (single TensorCore): one grid step per call -> tile_b = B.
    v7x (2 TCs): two 'parallel' tiles for large batches; never more than 2.
    tile_b is always == B or a multiple of 8 (sublane rule).
    """
    if num_batch_tiles is None:
        num_batch_tiles = 2 if B >= 512 else 1
    num_batch_tiles = max(1, min(int(num_batch_tiles), pl.cdiv(B, 8)))
    if num_batch_tiles == 1:
        return B
    return _round_up(pl.cdiv(B, num_batch_tiles), 8)


# ---------------------------------------------------------------------------
# Forward
# ---------------------------------------------------------------------------
def dqn_forward(state, prepared, num_batch_tiles=None):
    """state: [B, state_dim] f32; prepared: output of prepare_params().

    Returns [B, action_dim] f32 Q-values.
    """
    B, state_dim = state.shape
    assert state_dim == prepared["state_dim"]
    action_dim = prepared["action_dim"]

    w1, b1 = prepared["w1"], prepared["b1"]
    w2, b2 = prepared["w2"], prepared["b2"]
    w3, b3 = prepared["w3"], prepared["b3"]
    H1_P = w1.shape[1]
    H2_P = w2.shape[1]
    A_P = w3.shape[1]

    tile_b = _pick_tile_b(B, num_batch_tiles)
    grid = (pl.cdiv(B, tile_b),)  # trailing partial block (if any) is masked by Pallas

    # Advisory cost so XLA can schedule/overlap around this tiny custom call.
    flops = 2 * B * (state_dim * H1_P + H1_P * H2_P + H2_P * A_P)
    weight_bytes = 2 * (state_dim * H1_P + H1_P * H2_P + H2_P * A_P)  # bf16
    bias_bytes = 4 * (H1_P + H2_P + A_P)
    io_bytes = 4 * B * state_dim + 4 * B * action_dim
    cost = pl.CostEstimate(
        flops=flops, transcendentals=0,
        bytes_accessed=weight_bytes + bias_bytes + io_bytes,
    )

    out = pl.pallas_call(
        dqn_kernel,
        out_shape=jax.ShapeDtypeStruct((B, action_dim), jnp.float32),
        grid=grid,
        in_specs=[
            # Batch-tiled input at its natural feature width (last dim == full dim).
            pl.BlockSpec((tile_b, state_dim), lambda i: (i, 0)),
            # Weights / biases: constant index_map -> resident across batch tiles.
            pl.BlockSpec((state_dim, H1_P), lambda i: (0, 0)),
            pl.BlockSpec((1, H1_P), lambda i: (0, 0)),
            pl.BlockSpec((H1_P, H2_P), lambda i: (0, 0)),
            pl.BlockSpec((1, H2_P), lambda i: (0, 0)),
            pl.BlockSpec((H2_P, A_P), lambda i: (0, 0)),
            pl.BlockSpec((1, A_P), lambda i: (0, 0)),
        ],
        # Natural-width output: no padded Q matrix, no wrapper slice.
        out_specs=pl.BlockSpec((tile_b, action_dim), lambda i: (i, 0)),
        compiler_params=pltpu.CompilerParams(
            dimension_semantics=("parallel",),  # shard batch tiles across TCs on v7x
        ),
        cost_estimate=cost,
    )(state, w1, b1, w2, b2, w3, b3)

    return out


# ---------------------------------------------------------------------------
# Init + pure-JAX reference
# ---------------------------------------------------------------------------
def init_params(key, state_dim, hidden_dim, action_dim):
    """Deterministic PyTorch-style (uniform +/- 1/sqrt(fan_in)) init, f32."""
    ks = jax.random.split(key, 6)

    def linear(kw, kb, fan_in, fan_out):
        bound = 1.0 / jnp.sqrt(jnp.float32(fan_in))
        w = jax.random.uniform(kw, (fan_in, fan_out), jnp.float32, -bound, bound)
        b = jax.random.uniform(kb, (1, fan_out), jnp.float32, -bound, bound)
        return w, b

    w1, b1 = linear(ks[0], ks[1], state_dim, hidden_dim)
    w2, b2 = linear(ks[2], ks[3], hidden_dim, hidden_dim * 2)
    w3, b3 = linear(ks[4], ks[5], hidden_dim * 2, action_dim)
    return {"w1": w1, "b1": b1, "w2": w2, "b2": b2, "w3": w3, "b3": b3}


def dqn_forward_ref(state, params):
    h1 = _leaky_relu(state @ params["w1"] + params["b1"])
    h2 = _leaky_relu(h1 @ params["w2"] + params["b2"])
    return h2 @ params["w3"] + params["b3"]


if __name__ == "__main__":
    # CartPole: state_dim=4, action_dim=2; small hidden.
    state_dim, hidden_dim, action_dim = 4, 32, 2

    key = jax.random.PRNGKey(0)
    k_params, k_small, k_big = jax.random.split(key, 3)
    params = init_params(k_params, state_dim, hidden_dim, action_dim)

    # Pad/cast weights ONCE (would be redone only on param update / target sync).
    prepared = prepare_params(params)

    # 1) Small action-selection style call: single grid step, unpadded in/out.
    state_small = jax.random.normal(k_small, (2, state_dim), jnp.float32)
    out_small = jax.block_until_ready(dqn_forward(state_small, prepared))
    ref_small = dqn_forward_ref(state_small, params)
    assert out_small.shape == (2, action_dim)
    assert jnp.allclose(out_small, ref_small, atol=2e-2, rtol=2e-2)

    # 2) Replay-buffer style batch: B=512 -> two 'parallel' 256-row tiles
    #    (one per TC on v7x; near-free extra step on single-TC v5e/v6e).
    state_big = jax.random.normal(k_big, (512, state_dim), jnp.float32)
    out_big = jax.block_until_ready(dqn_forward(state_big, prepared))
    ref_big = dqn_forward_ref(state_big, params)
    assert out_big.shape == (512, action_dim)
    assert jnp.allclose(out_big, ref_big, atol=2e-2, rtol=2e-2)

    # 3) Single-step variant (forced v5e/v6e-style tiling) for the same batch.
    out_one = jax.block_until_ready(dqn_forward(state_big, prepared, num_batch_tiles=1))
    assert jnp.allclose(out_one, ref_big, atol=2e-2, rtol=2e-2)

    print("KERNEL_OK")
</pallas_src>

<mosaic_0001>
module attributes {stable_mosaic.version = 11 : i64} {
  func.func @dqn_kernel(%arg0: i32, %arg1: memref<2x4xf32, #tpu.memory_space<vmem>>, %arg2: memref<4x128xbf16, #tpu.memory_space<vmem>>, %arg3: memref<1x128xf32, #tpu.memory_space<vmem>>, %arg4: memref<128x128xbf16, #tpu.memory_space<vmem>>, %arg5: memref<1x128xf32, #tpu.memory_space<vmem>>, %arg6: memref<128x128xbf16, #tpu.memory_space<vmem>>, %arg7: memref<1x128xf32, #tpu.memory_space<vmem>>, %arg8: memref<2x2xf32, #tpu.memory_space<vmem>>) attributes {dimension_semantics = [#tpu.dimension_semantics<parallel>], iteration_bounds = array<i64: 1>, scalar_prefetch = 0 : i64, scratch_operands = 0 : i64, tpu.core_type = #tpu.core_type<tc>, window_params = [{transform_indices = @transform_0, window_bounds = array<i64: 2, 4>}, {pipeline_mode = #tpu.pipeline_mode<synchronous>, transform_indices = @transform_1, window_bounds = array<i64: 4, 128>}, {pipeline_mode = #tpu.pipeline_mode<synchronous>, transform_indices = @transform_2, window_bounds = array<i64: 1, 128>}, {pipeline_mode = #tpu.pipeline_mode<synchronous>, transform_indices = @transform_3, window_bounds = array<i64: 128, 128>}, {pipeline_mode = #tpu.pipeline_mode<synchronous>, transform_indices = @transform_4, window_bounds = array<i64: 1, 128>}, {pipeline_mode = #tpu.pipeline_mode<synchronous>, transform_indices = @transform_5, window_bounds = array<i64: 128, 128>}, {pipeline_mode = #tpu.pipeline_mode<synchronous>, transform_indices = @transform_6, window_bounds = array<i64: 1, 128>}, {transform_indices = @transform_7, window_bounds = array<i64: 2, 2>}]} {
    %c0 = arith.constant 0 : index
    %c0_0 = arith.constant 0 : index
    %0 = vector.load %arg1[%c0, %c0_0] : memref<2x4xf32, #tpu.memory_space<vmem>>, vector<2x4xf32>
    %1 = arith.truncf %0 : vector<2x4xf32> to vector<2x4xbf16>
    %c0_1 = arith.constant 0 : index
    %c0_2 = arith.constant 0 : index
    %2 = vector.load %arg2[%c0_1, %c0_2] : memref<4x128xbf16, #tpu.memory_space<vmem>>, vector<4x128xbf16>
    %cst = arith.constant dense<0.000000e+00> : vector<2x128xf32>
    %3 = tpu.matmul %1, %2, %cst {dimension_numbers = #tpu.dot_dimension_numbers<[1], [0], [0], [1], [0, 0, 1, 1], [], []>} : vector<2x4xbf16>, vector<4x128xbf16>, vector<2x128xf32> -> vector<2x128xf32>
    %c0_3 = arith.constant 0 : index
    %c0_4 = arith.constant 0 : index
    %4 = vector.load %arg3[%c0_3, %c0_4] : memref<1x128xf32, #tpu.memory_space<vmem>>, vector<1x128xf32>
    %5 = vector.broadcast %4 : vector<1x128xf32> to vector<2x128xf32>
    %6 = arith.addf %3, %5 : vector<2x128xf32>
    %cst_5 = arith.constant 0.000000e+00 : f32
    %7 = vector.broadcast %cst_5 : f32 to vector<2x128xf32>
    %8 = arith.cmpf ogt, %6, %7 : vector<2x128xf32>
    %cst_6 = arith.constant 0.00999999977 : f32
    %9 = vector.broadcast %cst_6 : f32 to vector<2x128xf32>
    %10 = arith.mulf %9, %6 : vector<2x128xf32>
    %11 = arith.select %8, %6, %10 : vector<2x128xi1>, vector<2x128xf32>
    %12 = arith.truncf %11 : vector<2x128xf32> to vector<2x128xbf16>
    %c0_7 = arith.constant 0 : index
    %c0_8 = arith.constant 0 : index
    %13 = vector.load %arg4[%c0_7, %c0_8] : memref<128x128xbf16, #tpu.memory_space<vmem>>, vector<128x128xbf16>
    %cst_9 = arith.constant dense<0.000000e+00> : vector<2x128xf32>
    %14 = tpu.matmul %12, %13, %cst_9 {dimension_numbers = #tpu.dot_dimension_numbers<[1], [0], [0], [1], [0, 0, 1, 1], [], []>} : vector<2x128xbf16>, vector<128x128xbf16>, vector<2x128xf32> -> vector<2x128xf32>
    %c0_10 = arith.constant 0 : index
    %c0_11 = arith.constant 0 : index
    %15 = vector.load %arg5[%c0_10, %c0_11] : memref<1x128xf32, #tpu.memory_space<vmem>>, vector<1x128xf32>
    %16 = vector.broadcast %15 : vector<1x128xf32> to vector<2x128xf32>
    %17 = arith.addf %14, %16 : vector<2x128xf32>
    %cst_12 = arith.constant 0.000000e+00 : f32
    %18 = vector.broadcast %cst_12 : f32 to vector<2x128xf32>
    %19 = arith.cmpf ogt, %17, %18 : vector<2x128xf32>
    %cst_13 = arith.constant 0.00999999977 : f32
    %20 = vector.broadcast %cst_13 : f32 to vector<2x128xf32>
    %21 = arith.mulf %20, %17 : vector<2x128xf32>
    %22 = arith.select %19, %17, %21 : vector<2x128xi1>, vector<2x128xf32>
    %23 = arith.truncf %22 : vector<2x128xf32> to vector<2x128xbf16>
    %c0_14 = arith.constant 0 : index
    %c0_15 = arith.constant 0 : index
    %24 = vector.load %arg6[%c0_14, %c0_15] : memref<128x128xbf16, #tpu.memory_space<vmem>>, vector<128x128xbf16>
    %cst_16 = arith.constant dense<0.000000e+00> : vector<2x128xf32>
    %25 = tpu.matmul %23, %24, %cst_16 {dimension_numbers = #tpu.dot_dimension_numbers<[1], [0], [0], [1], [0, 0, 1, 1], [], []>} : vector<2x128xbf16>, vector<128x128xbf16>, vector<2x128xf32> -> vector<2x128xf32>
    %c0_17 = arith.constant 0 : index
    %c0_18 = arith.constant 0 : index
    %26 = vector.load %arg7[%c0_17, %c0_18] : memref<1x128xf32, #tpu.memory_space<vmem>>, vector<1x128xf32>
    %27 = vector.broadcast %26 : vector<1x128xf32> to vector<2x128xf32>
    %28 = arith.addf %25, %27 : vector<2x128xf32>
    %29 = vector.extract_strided_slice %28 {offsets = [0, 0], sizes = [2, 2], strides = [1, 1]} : vector<2x128xf32> to vector<2x2xf32>
    %c0_19 = arith.constant 0 : index
    %c0_20 = arith.constant 0 : index
    %30 = vector.load %arg8[%c0_19, %c0_20] : memref<2x2xf32, #tpu.memory_space<vmem>>, vector<2x2xf32>
    tpu.vector_store %arg8[%c0_19, %c0_20], %29 {strides = array<i32>} : memref<2x2xf32, #tpu.memory_space<vmem>>, vector<2x2xf32>,
    return
  }
  func.func @transform_0(%arg0: i32) -> (i32, i32) {
    %c0_i32 = arith.constant 0 : i32
    %c0_i32_0 = arith.constant 0 : i32
    return %arg0, %c0_i32 : i32, i32
  }
  func.func @transform_1(%arg0: i32) -> (i32, i32) {
    %c0_i32 = arith.constant 0 : i32
    %c0_i32_0 = arith.constant 0 : i32
    %c0_i32_1 = arith.constant 0 : i32
    return %c0_i32, %c0_i32_0 : i32, i32
  }
  func.func @transform_2(%arg0: i32) -> (i32, i32) {
    %c0_i32 = arith.constant 0 : i32
    %c0_i32_0 = arith.constant 0 : i32
    %c0_i32_1 = arith.constant 0 : i32
    return %c0_i32, %c0_i32_0 : i32, i32
  }
  func.func @transform_3(%arg0: i32) -> (i32, i32) {
    %c0_i32 = arith.constant 0 : i32
    %c0_i32_0 = arith.constant 0 : i32
    %c0_i32_1 = arith.constant 0 : i32
    return %c0_i32, %c0_i32_0 : i32, i32
  }
  func.func @transform_4(%arg0: i32) -> (i32, i32) {
    %c0_i32 = arith.constant 0 : i32
    %c0_i32_0 = arith.constant 0 : i32
    %c0_i32_1 = arith.constant 0 : i32
    return %c0_i32, %c0_i32_0 : i32, i32
  }
  func.func @transform_5(%arg0: i32) -> (i32, i32) {
    %c0_i32 = arith.constant 0 : i32
    %c0_i32_0 = arith.constant 0 : i32
    %c0_i32_1 = arith.constant 0 : i32
    return %c0_i32, %c0_i32_0 : i32, i32
  }
  func.func @transform_6(%arg0: i32) -> (i32, i32) {
    %c0_i32 = arith.constant 0 : i32
    %c0_i32_0 = arith.constant 0 : i32
    %c0_i32_1 = arith.constant 0 : i32
    return %c0_i32, %c0_i32_0 : i32, i32
  }
  func.func @transform_7(%arg0: i32) -> (i32, i32) {
    %c0_i32 = arith.constant 0 : i32
    %c0_i32_0 = arith.constant 0 : i32
    return %arg0, %c0_i32 : i32, i32
  }
}

</mosaic_0001>

<bundles_post_ra>
// kernel: tpu_custom_call.1
= control target key start
LH: loop header
LB: loop body
LE: loop exit
PB: predicated region body
PF: predicated region fallthrough
CT: control target
= control target key end

     0   :  { %12 = vsyncpa [#allocation3], 0  ;;  %s714_s0 = inlined_call_operand.hbm [shape: f32[2,4], index: 0, kind: input, shape index: {}]   ;;  %s715_s1 = inlined_call_operand.vmem [shape: bf16[4,128], index: 1, kind: input, shape index: {}]   ;;  %s716_s2 = inlined_call_operand.vmem [shape: f32[1,128], index: 2, kind: input, shape index: {}]   ;;  %s717_s3 = inlined_call_operand.hbm [shape: bf16[128,128], index: 3, kind: input, shape index: {}]   ;;  %s718_s4 = inlined_call_operand.vmem [shape: f32[1,128], index: 4, kind: input, shape index: {}]   ;;  %s719_s5 = inlined_call_operand.hbm [shape: bf16[128,128], index: 5, kind: input, shape index: {}]   ;;  %s720_s6 = inlined_call_operand.vmem [shape: f32[1,128], index: 6, kind: input, shape index: {}]   ;;  %s721_s7 = inlined_call_operand.hbm [shape: f32[2,2], index: 7, kind: output, shape index: {}]  }
   0x1   :  { %13 = vsyncpa [#allocation6], 0 }
   0x2   :  { %14 = vsyncpa [#allocation4], 0  ;;  %s577_s24 = smov [#allocation5]   ;;  %s483_s28 = scalar_lea.hbm %s717_s3, 1024 }
   0x3   :  { %s34_s25 = sshll.u32 %s577_s24, 4  ;;  %p484_p0 = scmp.ne.s32.totalorder %s717_s3, %s483_s28  ;;  %s35_s25 = int_to_ptr.vmem [resolvable:$true] %s34_s25 }
   0x4   :  { %p487_p1 = scmp.lt.u32.totalorder %s483_s28, %s717_s3 }
   0x6   :  { %p489_p2 = pnand %p487_p1, %p484_p0 }
   0x8   :  { %492 = shalt.err (!%p489_p2)
}
   0x9   :  { %s493_s10 = scalar_lea.vmem %s35_s25, 1024  ;;  %p498_p4 = scmp.lt.s32.totalorder %s35_s25, %s35_s25 }
   0xa   :  { %p494_p3 = scmp.ne.s32.totalorder %s35_s25, %s493_s10  ;;  %p499_p5 = scmp.lt.s32.totalorder %s493_s10, %s493_s10 }
   0xc   :  { %p500_p6 = por %p499_p5, %p498_p4 }
   0xe   :  { %p501_p7 = pnand %p500_p6, %p494_p3 }
  0x10   :  { %504 = shalt.err (!%p501_p7)
}
  0x11   :  { %s578_s11 = smov 64   ;;  %s579_s12 = smov 4  }
  0x12   :  { %40 = dma.hbm_to_vmem [thread:$0]  %s717_s3, 1024, %s35_s25, [#allocation6], %s578_s11, %s578_s11, %s579_s12  }
  0x13   :  { %s580_s15 = smov [#allocation2]   ;;  %s581_s17 = smov [#allocation7]  }
  0x14   :  { %s21_s16 = sshll.u32 %s580_s15, 4  ;;  %s48_s18 = sshll.u32 %s581_s17, 4  ;;  %s22_s16 = int_to_ptr.vmem [resolvable:$true] %s21_s16  ;;  %s49_s18 = int_to_ptr.vmem [resolvable:$true] %s48_s18 }
  0x15   :  { %s505_s21 = scalar_lea.hbm %s714_s0, 32 }
  0x16   :  { %p506_p8 = scmp.ne.s32.totalorder %s714_s0, %s505_s21  ;;  %p509_p9 = scmp.lt.u32.totalorder %s505_s21, %s714_s0 }
  0x18   :  { %p511_p10 = pnand %p509_p9, %p506_p8 }
  0x1a   :  { %514 = shalt.err (!%p511_p10)
}
  0x1b   :  { %s515_s3 = scalar_lea.vmem %s22_s16, 32  ;;  %p520_p12 = scmp.lt.s32.totalorder %s22_s16, %s22_s16 }
  0x1c   :  { %p516_p11 = scmp.ne.s32.totalorder %s22_s16, %s515_s3  ;;  %p521_p13 = scmp.lt.s32.totalorder %s515_s3, %s515_s3 }
  0x1e   :  { %p522_p0 = por %p521_p13, %p520_p12 }
  0x20   :  { %p523_p1 = pnand %p522_p0, %p516_p11 }
  0x22   :  { %526 = shalt.err (!%p523_p1)
}
  0x23   :  { %24 = dma.hbm_to_vmem [thread:$0]  %s714_s0, 32, %s22_s16, [#allocation3]  }
  0x24   :  { %s527_s30 = scalar_lea.hbm %s719_s5, 1024 }
  0x25   :  { %p528_p2 = scmp.ne.s32.totalorder %s719_s5, %s527_s30  ;;  %p531_p3 = scmp.lt.u32.totalorder %s527_s30, %s719_s5 }
  0x27   :  { %p533_p4 = pnand %p531_p3, %p528_p2 }
  0x29   :  { %536 = shalt.err (!%p533_p4)
}
  0x2a   :  { %s537_s14 = scalar_lea.vmem %s49_s18, 1024  ;;  %p542_p6 = scmp.lt.s32.totalorder %s49_s18, %s49_s18 }
  0x2b   :  { %p538_p5 = scmp.ne.s32.totalorder %s49_s18, %s537_s14  ;;  %p543_p7 = scmp.lt.s32.totalorder %s537_s14, %s537_s14 }
  0x2d   :  { %p544_p8 = por %p543_p7, %p542_p6 }
  0x2f   :  { %p545_p9 = pnand %p544_p8, %p538_p5 }
  0x31   :  { %548 = shalt.err (!%p545_p9)
}
  0x32   :  { %54 = dma.hbm_to_vmem [thread:$0]  %s719_s5, 1024, %s49_s18, [#allocation6], %s578_s11, %s578_s11, %s579_s12  }
  0x33   :  { %571 = dma.done.wait [#allocation3], 32  }
  0x34   :  { %572 = vsyncadd [#allocation3], 4294967264 }
  0x35   :  { %573 = dma.done.wait [#allocation6], 2048  }
  0x36   :  { %574 = vsyncadd [#allocation6], 4294965248  ;;  %v582_v0 = vmov 0.0   ;;  %vm583_vm0 = vmmov 0   ;;  %vm81_vm1 = vcmask 1041408   ;;  %v467_v5 = vld [vmem:[#allocation5] sm:$0xff]  }
  0x37   :  { %413 = vmatprep.subr.bf16.mxu0 %v582_v0  ;;  %415 = vmatprep.mubr.msk.bf16.mxu0 %vm583_vm0, %v582_v0  ;;  %v69_v1 = vld [vmem:[%s715_s1] sm:$0x3]  ;;  %vm77_vm2 = vcmask 31744   ;;  %v468_v6 = vld [vmem:[#allocation5 + $0x8] sm:$0xff]   ;;  %v469_v7 = vld [vmem:[#allocation5 + $0x10] sm:$0xff]   ;;  %s584_s19 = smov [#allocation8]  }
  0x38   :  { %419 = vmatprep.subr.bf16.mxu1 %v582_v0  ;;  %435 = vmatprep.mubr.msk.bf16.mxu1 %vm583_vm0, %v582_v0  ;;  %v67_v2 = vld [vmem:[#allocation2] sm:$0x3]  ;;  %v83_v3 = vsel %vm81_vm1, %v69_v1, 0  ;;  %v471_v9 = vld [vmem:[#allocation5 + $0x20] sm:$0xff]   ;;  %v472_v10 = vld [vmem:[#allocation5 + $0x28] sm:$0xff]   ;;  %s363_s20 = sshll.u32 %s584_s19, 4  ;;  %s364_s20 = int_to_ptr.vmem [resolvable:$true] %s363_s20 }
  0x39   :  { %v68_v4 = vpack.c.bf16 %v67_v2, %v67_v2  ;;  %414 = vmatpush3.bf16.msra.mxu0 %v83_v3  ;;  %420 = vmatpush3.bf16.msra.mxu1 %v467_v5  ;;  %v470_v8 = vld [vmem:[#allocation5 + $0x18] sm:$0xff]   ;;  %v473_v11 = vld [vmem:[#allocation5 + $0x30] sm:$0xff]   ;;  %v475_v13 = vld [vmem:[#allocation7] sm:$0xff]   ;;  %vm355_vm5 = vcmask 9216   ;;  %p554_p11 = scmp.lt.s32.totalorder %s364_s20, %s364_s20 }
  0x3a   :  { %439 = vmatprep.subr.bf16.mxu0 %v582_v0  ;;  %421 = vmatprep.subr.bf16.mxu1 %v582_v0  ;;  %v474_v12 = vld [vmem:[#allocation5 + $0x38] sm:$0xff]   ;;  %v476_v14 = vld [vmem:[#allocation7 + $0x8] sm:$0xff]   ;;  %v477_v15 = vld [vmem:[#allocation7 + $0x10] sm:$0xff]  }
  0x3b   :  { %v478_v16 = vld [vmem:[#allocation7 + $0x18] sm:$0xff]   ;;  %v479_v17 = vld [vmem:[#allocation7 + $0x20] sm:$0xff]   ;;  %v480_v18 = vld [vmem:[#allocation7 + $0x28] sm:$0xff]  }
  0x3c   :  { %416 = vmatmul.mubr.msk.bf16.vlgmr.msra.gmra.mrb[0].mxu0 %vm77_vm2, %v68_v4  ;;  %v373_v19 = vld [vmem:[%s716_s2] ss:$0 sm:$0xff]  ;;  %v481_v28 = vld [vmem:[#allocation7 + $0x30] sm:$0xff]  }
  0x3d   :  { %455 = vmatprep.mubr.msk.bf16.mxu0 %vm583_vm0, %v582_v0  ;;  %422 = vmatpush3.bf16.msra.mxu1 %v468_v6  ;;  %v482_v29 = vld [vmem:[#allocation7 + $0x38] sm:$0xff]  }
  0x3e   :  { %423 = vmatprep.subr.bf16.mxu1 %v582_v0  ;;  %440 = vmatpush3.bf16.msra.mxu0 %v475_v13  ;;  %v375_v30 = vld [vmem:[%s718_s4] ss:$0 sm:$0xff]  ;;  %s549_s4 = scalar_lea.vmem %s364_s20, 32 }
  0x3f   :  { %441 = vmatprep.subr.bf16.mxu0 %v582_v0  ;;  %v384_v39 = vld [vmem:[%s720_s6] ss:$0 sm:$0xff]  ;;  %p550_p10 = scmp.ne.s32.totalorder %s364_s20, %s549_s4  ;;  %p555_p12 = scmp.lt.s32.totalorder %s549_s4, %s549_s4 }
  0x41   :  { %424 = vmatpush3.bf16.msra.mxu1 %v469_v7  ;;  %p556_p13 = por %p555_p12, %p554_p11 }
  0x42   :  { %425 = vmatprep.subr.bf16.mxu1 %v582_v0  ;;  %442 = vmatpush3.bf16.msra.mxu0 %v476_v14 }
  0x43   :  { %443 = vmatprep.subr.bf16.mxu0 %v582_v0  ;;  %p557_p0 = pnand %p556_p13, %p550_p10 }
  0x45   :  { %426 = vmatpush3.bf16.msra.mxu1 %v470_v8 }
  0x46   :  { %427 = vmatprep.subr.bf16.mxu1 %v582_v0  ;;  %444 = vmatpush3.bf16.msra.mxu0 %v477_v15 }
  0x47   :  { %445 = vmatprep.subr.bf16.mxu0 %v582_v0 }
  0x49   :  { %428 = vmatpush3.bf16.msra.mxu1 %v471_v9 }
  0x4a   :  { %429 = vmatprep.subr.bf16.mxu1 %v582_v0  ;;  %446 = vmatpush3.bf16.msra.mxu0 %v478_v16 }
  0x4b   :  { %447 = vmatprep.subr.bf16.mxu0 %v582_v0 }
  0x4d   :  { %430 = vmatpush3.bf16.msra.mxu1 %v472_v10 }
  0x4e   :  { %431 = vmatprep.subr.bf16.mxu1 %v582_v0  ;;  %448 = vmatpush3.bf16.msra.mxu0 %v479_v17 }
  0x4f   :  { %449 = vmatprep.subr.bf16.mxu0 %v582_v0 }
  0x51   :  { %432 = vmatpush3.bf16.msra.mxu1 %v473_v11 }
  0x52   :  { %433 = vmatprep.subr.bf16.mxu1 %v582_v0  ;;  %450 = vmatpush3.bf16.msra.mxu0 %v480_v18 }
  0x53   :  { %451 = vmatprep.subr.bf16.mxu0 %v582_v0 }
  0x55   :  { %434 = vmatpush3.bf16.msra.mxu1 %v474_v12 }
  0x56   :  { %452 = vmatpush3.bf16.msra.mxu0 %v481_v28 }
  0x57   :  { %453 = vmatprep.subr.bf16.mxu0 %v582_v0 }
  0x5a   :  { %454 = vmatpush3.bf16.msra.mxu0 %v482_v29 }
 0x10f   :  { %v119_v20 = vpop.f32.mrb[0].mxu0 }
 0x110   :  { %v120_v21 = vadd.f32 %v373_v19, %v119_v20  ;;  %v417_v22 = vpop.f32.mrb[1].mxu0 }
 0x111   :  { %v122_v23 = vpop.f32.mrb[2].mxu0 }
 0x112   :  { %vm125_vm3 = vcmp.gt.f32.partialorder %v120_v21, 0.0  ;;  %v126_v24 = vmul.f32 0.01, %v120_v21  ;;  %v418_v25 = vpop.f32.mrb[3].mxu0 }
 0x114   :  { %v127_v26 = vsel %vm125_vm3, %v120_v21, %v126_v24 }
 0x115   :  { %v128_v27 = vpack.c.bf16 %v127_v26, %v127_v26 }
 0x117   :  { %436 = vmatmul.mubr.bf16.vlgmr.msra.gmra.mrb[0].mxu1 %v128_v27 }
 0x1ea   :  { %v234_v31 = vpop.f32.mrb[0].mxu1 }
 0x1eb   :  { %v235_v32 = vadd.f32 %v375_v30, %v234_v31  ;;  %v437_v33 = vpop.f32.mrb[1].mxu1 }
 0x1ec   :  { %v237_v34 = vpop.f32.mrb[2].mxu1 }
 0x1ed   :  { %vm240_vm4 = vcmp.gt.f32.partialorder %v235_v32, 0.0  ;;  %v241_v35 = vmul.f32 0.01, %v235_v32  ;;  %v438_v36 = vpop.f32.mrb[3].mxu1 }
 0x1ef   :  { %v242_v37 = vsel %vm240_vm4, %v235_v32, %v241_v35 }
 0x1f0   :  { %v243_v38 = vpack.c.bf16 %v242_v37, %v242_v37 }
 0x1f2   :  { %456 = vmatmul.mubr.bf16.vlgmr.msra.gmra.mrb[4].mxu0 %v243_v38 }
 0x2c5   :  { %v349_v40 = vpop.f32.mrb[4].mxu0 }
 0x2c6   :  { %v350_v41 = vadd.f32 %v384_v39, %v349_v40  ;;  %v457_v42 = vpop.f32.mrb[5].mxu0 }
 0x2c7   :  { %v352_v43 = vpop.f32.mrb[6].mxu0 }
 0x2c8   :  { %v458_v44 = vpop.f32.mrb[7].mxu0  ;;  %356 = vst.msk [vmem:[#allocation8] sm:$0x3] %vm355_vm5, %v350_v41 }
 0x2c9   :  { %560 = shalt.err (!%p557_p0)
}
 0x2ca   :  { %s561_s6 = scalar_lea.hbm %s721_s7, 32 }
 0x2cb   :  { %p562_p1 = scmp.ne.s32.totalorder %s721_s7, %s561_s6  ;;  %p565_p2 = scmp.lt.u32.totalorder %s561_s6, %s721_s7 }
 0x2cd   :  { %p567_p3 = pnand %p565_p2, %p562_p1 }
 0x2cf   :  { %570 = shalt.err (!%p567_p3)
}
 0x2d0   :  { %366 = dma.vmem_to_hbm [thread:$0]  %s364_s20, 32, %s721_s7, [#allocation4]  }
 0x2d1   :  { %575 = dma.done.wait [#allocation4], 32  }
 0x2d2   :  { %576 = vsyncadd [#allocation4], 4294967264 }
 0x2d3   :  { %370 = vsyncpa [#allocation3], 1 }
 0x2d4   :  { %371 = vsyncpa [#allocation6], 1 }
 0x2d5   :  { %372 = vsyncpa [#allocation4], 1 }

</bundles_post_ra>
